<compile_context>
chip_gen: v6e
topology: v6e:2x2x1
jax: 0.10.0
libtpu: 0.0.40
codegen_flags: <defaults>
</compile_context>

<pallas_src>
import functools

import jax
import jax.numpy as jnp
from jax import lax
from jax.experimental import pallas as pl
from jax.experimental.pallas import tpu as pltpu


def _round_up(x, m):
    return ((x + m - 1) // m) * m


def _pick_tile(dim, candidates):
    """Pick the tile minimizing padded size; prefer the largest tile on ties."""
    best_tile, best_pad = None, None
    for c in candidates:
        padded = _round_up(dim, c)
        if best_pad is None or padded < best_pad or (padded == best_pad and c > best_tile):
            best_tile, best_pad = c, padded
    return best_tile, best_pad


def _maybe_pad2(a, rows, cols):
    pr, pc = rows - a.shape[0], cols - a.shape[1]
    if pr == 0 and pc == 0:
        return a
    return jnp.pad(a, ((0, pr), (0, pc)))


def _admm_linear_kernel(x_ref, w_ref, t_ref, b_ref, o_ref):
    """One (tm, tn) f32 output tile; K-tiled reduction accumulating into o_ref.

    x_ref: (tm, tk) bf16 activations
    w_ref: (tn, tk) bf16 weight tile   (natural (OUT, IN) layout)
    t_ref: (tn, tk) bf16 ternary tile  (natural (OUT, IN) layout)
    b_ref: (1, tn)  f32 bias
    o_ref: (tm, tn) f32 output; resident across the K axis (acts as accumulator)
    """
    k = pl.program_id(2)

    @pl.when(k == 0)
    def _init():
        o_ref[...] = jnp.broadcast_to(b_ref[...], o_ref.shape)

    # Blend the ternary constraint on the VPU (separate VLIW slots -> ~free
    # under the MXU-bound loop), then feed bf16 operands to the MXU.
    w_eff = (
        w_ref[...].astype(jnp.float32) * 0.9 + t_ref[...].astype(jnp.float32) * 0.1
    ).astype(jnp.bfloat16)

    # (tm, tk) x (tn, tk) contracted over the last dims -> (tm, tn), f32 acc.
    o_ref[...] += lax.dot_general(
        x_ref[...],
        w_eff,
        dimension_numbers=(((1,), (1,)), ((), ())),
        preferred_element_type=jnp.float32,
    )


def admm_linear_forward(x, weight, ternary_weight, bias):
    """Forward of ADMMLinear: x @ (w + 0.1*(t - w)).T + b  (== (0.9*w + 0.1*t))."""
    B, IN = x.shape
    OUT = weight.shape[0]

    # Adaptive tiles: minimize padding waste; prefer bigger tiles (weight reuse,
    # fewer K steps). Sublane tiles are multiples of 16 (bf16 packing), lane
    # tiles multiples of 128.
    tm, M_pad = _pick_tile(B, (1024, 512, 256, 128, 64, 32, 16))
    tn, N_pad = _pick_tile(OUT, (512, 256, 128))
    tk, K_pad = _pick_tile(IN, (1024, 512, 256, 128))

    # bf16 MXU operand streams (zero-padded only when the shape isn't aligned).
    x_p = _maybe_pad2(x.astype(jnp.bfloat16), M_pad, K_pad)
    w_p = _maybe_pad2(weight.astype(jnp.bfloat16), N_pad, K_pad)
    t_p = _maybe_pad2(ternary_weight.astype(jnp.bfloat16), N_pad, K_pad)
    b_p = bias.astype(jnp.float32)
    if N_pad != OUT:
        b_p = jnp.pad(b_p, (0, N_pad - OUT))
    b_p = b_p.reshape(1, N_pad)

    grid = (M_pad // tm, N_pad // tn, K_pad // tk)

    flops = 2 * M_pad * N_pad * K_pad
    bytes_accessed = (
        x_p.size * 2 + w_p.size * 2 + t_p.size * 2 + b_p.size * 4 + M_pad * N_pad * 4
    )

    out_padded = pl.pallas_call(
        _admm_linear_kernel,
        out_shape=jax.ShapeDtypeStruct((M_pad, N_pad), jnp.float32),
        grid_spec=pltpu.PrefetchScalarGridSpec(
            num_scalar_prefetch=0,
            grid=grid,
            in_specs=[
                pl.BlockSpec((tm, tk), lambda i, j, k: (i, k)),   # x
                pl.BlockSpec((tn, tk), lambda i, j, k: (j, k)),   # weight (OUT, IN)
                pl.BlockSpec((tn, tk), lambda i, j, k: (j, k)),   # ternary (OUT, IN)
                pl.BlockSpec((1, tn), lambda i, j, k: (0, j)),    # bias
            ],
            out_specs=pl.BlockSpec((tm, tn), lambda i, j, k: (i, j)),
        ),
        compiler_params=pltpu.CompilerParams(
            dimension_semantics=("parallel", "parallel", "arbitrary"),
            vmem_limit_bytes=32 * 1024 * 1024,
        ),
        cost_estimate=pl.CostEstimate(
            flops=flops, bytes_accessed=bytes_accessed, transcendentals=0
        ),
    )(x_p, w_p, t_p, b_p)

    out = out_padded
    if M_pad != B or N_pad != OUT:
        out = out[:B, :OUT]
    return out.astype(x.dtype)


def init_admm_linear_params(key, in_features, out_features):
    """Deterministic replication of ADMMLinear.__init__ parameter setup."""
    k_w, k_b = jax.random.split(key)
    weight = jax.random.normal(k_w, (out_features, in_features), jnp.float32) * 0.1
    # initial ternary buffer: threshold = 0.1 * mean(|w|); values in {-0.1, 0, +0.1}
    thr = 0.1 * jnp.mean(jnp.abs(weight))
    ternary = jnp.where(
        weight > thr, 0.1, jnp.where(weight < -thr, -0.1, jnp.zeros_like(weight))
    )
    bias = jax.random.normal(k_b, (out_features,), jnp.float32) * 0.01
    # NOTE: alpha / dual_variable / rho only affect admm_update(), not forward.
    return weight, ternary, bias


def admm_linear_ref(x, weight, ternary_weight, bias):
    eff = weight + 0.1 * (ternary_weight - weight)
    return x @ eff.T + bias[None, :]


if __name__ == "__main__":
    key = jax.random.PRNGKey(0)
    k_params, k_x, k2 = jax.random.split(key, 3)

    # Small shape consistent with the module: batch=8, in_features=32, out_features=16.
    batch, in_features, out_features = 8, 32, 16
    weight, ternary, bias = init_admm_linear_params(k_params, in_features, out_features)
    x = jax.random.normal(k_x, (batch, in_features), jnp.float32)

    fwd = jax.jit(admm_linear_forward)
    out = jax.block_until_ready(fwd(x, weight, ternary, bias))
    ref = admm_linear_ref(x, weight, ternary, bias)
    assert out.shape == (batch, out_features)
    # bf16 MXU operands -> loosened tolerance vs the f32 reference.
    assert jnp.allclose(out, ref, atol=2e-2, rtol=2e-2), "mismatch vs reference (small)"

    # Second check: exercises the multi-step K reduction (pl.when init / accumulate)
    # and non-tile-multiple M / N padding paths.
    b2, in2, out2 = 200, 300, 150
    w2, t2, b2_bias = init_admm_linear_params(k2, in2, out2)
    x2 = jax.random.normal(jax.random.fold_in(k2, 1), (b2, in2), jnp.float32)
    out_b = jax.block_until_ready(jax.jit(admm_linear_forward)(x2, w2, t2, b2_bias))
    ref_b = admm_linear_ref(x2, w2, t2, b2_bias)
    assert out_b.shape == (b2, out2)
    assert jnp.allclose(out_b, ref_b, atol=8e-2, rtol=5e-2), "mismatch vs reference (padded)"

    print("KERNEL_OK")
</pallas_src>

<mosaic_0001>
module attributes {stable_mosaic.version = 11 : i64} {
  func.func @_admm_linear_kernel(%arg0: i32, %arg1: i32, %arg2: i32, %arg3: memref<16x128xbf16, #tpu.memory_space<vmem>>, %arg4: memref<128x128xbf16, #tpu.memory_space<vmem>>, %arg5: memref<128x128xbf16, #tpu.memory_space<vmem>>, %arg6: memref<1x128xf32, #tpu.memory_space<vmem>>, %arg7: memref<16x128xf32, #tpu.memory_space<vmem>>) attributes {dimension_semantics = [#tpu.dimension_semantics<parallel>, #tpu.dimension_semantics<parallel>, #tpu.dimension_semantics<arbitrary>], iteration_bounds = array<i64: 1, 1, 1>, scalar_prefetch = 0 : i64, scratch_operands = 0 : i64, tpu.core_type = #tpu.core_type<tc>, window_params = [{transform_indices = @transform_0, window_bounds = array<i64: 16, 128>}, {transform_indices = @transform_1, window_bounds = array<i64: 128, 128>}, {transform_indices = @transform_2, window_bounds = array<i64: 128, 128>}, {transform_indices = @transform_3, window_bounds = array<i64: 1, 128>}, {transform_indices = @transform_4, window_bounds = array<i64: 16, 128>}]} {
    %c0_i32 = arith.constant 0 : i32
    %0 = arith.cmpi eq, %arg2, %c0_i32 : i32
    %1 = arith.extui %0 : i1 to i32
    %c0_i32_0 = arith.constant 0 : i32
    %2 = arith.cmpi ne, %1, %c0_i32_0 : i32
    scf.if %2 {
      %c0_12 = arith.constant 0 : index
      %c0_13 = arith.constant 0 : index
      %18 = vector.load %arg6[%c0_12, %c0_13] : memref<1x128xf32, #tpu.memory_space<vmem>>, vector<1x128xf32>
      %19 = vector.shape_cast %18 : vector<1x128xf32> to vector<1x128xf32>
      %20 = vector.broadcast %19 : vector<1x128xf32> to vector<16x128xf32>
      %c0_14 = arith.constant 0 : index
      %c0_15 = arith.constant 0 : index
      %21 = vector.load %arg7[%c0_14, %c0_15] : memref<16x128xf32, #tpu.memory_space<vmem>>, vector<16x128xf32>
      tpu.vector_store %arg7[%c0_14, %c0_15], %20 {strides = array<i32>} : memref<16x128xf32, #tpu.memory_space<vmem>>, vector<16x128xf32>,
    } else {
    }
    %c0 = arith.constant 0 : index
    %c0_1 = arith.constant 0 : index
    %3 = vector.load %arg4[%c0, %c0_1] : memref<128x128xbf16, #tpu.memory_space<vmem>>, vector<128x128xbf16>
    %4 = arith.extf %3 : vector<128x128xbf16> to vector<128x128xf32>
    %cst = arith.constant 0.899999976 : f32
    %5 = vector.broadcast %cst : f32 to vector<128x128xf32>
    %6 = arith.mulf %4, %5 : vector<128x128xf32>
    %c0_2 = arith.constant 0 : index
    %c0_3 = arith.constant 0 : index
    %7 = vector.load %arg5[%c0_2, %c0_3] : memref<128x128xbf16, #tpu.memory_space<vmem>>, vector<128x128xbf16>
    %8 = arith.extf %7 : vector<128x128xbf16> to vector<128x128xf32>
    %cst_4 = arith.constant 1.000000e-01 : f32
    %9 = vector.broadcast %cst_4 : f32 to vector<128x128xf32>
    %10 = arith.mulf %8, %9 : vector<128x128xf32>
    %11 = arith.addf %6, %10 : vector<128x128xf32>
    %12 = arith.truncf %11 : vector<128x128xf32> to vector<128x128xbf16>
    %c0_5 = arith.constant 0 : index
    %c0_6 = arith.constant 0 : index
    %13 = vector.load %arg7[%c0_5, %c0_6] : memref<16x128xf32, #tpu.memory_space<vmem>>, vector<16x128xf32>
    %c0_7 = arith.constant 0 : index
    %c0_8 = arith.constant 0 : index
    %14 = vector.load %arg3[%c0_7, %c0_8] : memref<16x128xbf16, #tpu.memory_space<vmem>>, vector<16x128xbf16>
    %cst_9 = arith.constant dense<0.000000e+00> : vector<16x128xf32>
    %15 = tpu.matmul %14, %12, %cst_9 {dimension_numbers = #tpu.dot_dimension_numbers<[1], [1], [0], [0], [0, 0, 1, 0], [], []>} : vector<16x128xbf16>, vector<128x128xbf16>, vector<16x128xf32> -> vector<16x128xf32>
    %16 = arith.addf %13, %15 : vector<16x128xf32>
    %c0_10 = arith.constant 0 : index
    %c0_11 = arith.constant 0 : index
    %17 = vector.load %arg7[%c0_10, %c0_11] : memref<16x128xf32, #tpu.memory_space<vmem>>, vector<16x128xf32>
    tpu.vector_store %arg7[%c0_10, %c0_11], %16 {strides = array<i32>} : memref<16x128xf32, #tpu.memory_space<vmem>>, vector<16x128xf32>,
    return
  }
  func.func @transform_0(%arg0: i32, %arg1: i32, %arg2: i32) -> (i32, i32) {
    %c0_i32 = arith.constant 0 : i32
    return %arg0, %arg2 : i32, i32
  }
  func.func @transform_1(%arg0: i32, %arg1: i32, %arg2: i32) -> (i32, i32) {
    %c0_i32 = arith.constant 0 : i32
    return %arg1, %arg2 : i32, i32
  }
  func.func @transform_2(%arg0: i32, %arg1: i32, %arg2: i32) -> (i32, i32) {
    %c0_i32 = arith.constant 0 : i32
    return %arg1, %arg2 : i32, i32
  }
  func.func @transform_3(%arg0: i32, %arg1: i32, %arg2: i32) -> (i32, i32) {
    %c0_i32 = arith.constant 0 : i32
    %c0_i32_0 = arith.constant 0 : i32
    return %c0_i32, %arg1 : i32, i32
  }
  func.func @transform_4(%arg0: i32, %arg1: i32, %arg2: i32) -> (i32, i32) {
    %c0_i32 = arith.constant 0 : i32
    return %arg0, %arg1 : i32, i32
  }
}

</mosaic_0001>

<bundles_post_ra>
// kernel: admm_linear_forward.1
= control target key start
LH: loop header
LB: loop body
LE: loop exit
PB: predicated region body
PF: predicated region fallthrough
CT: control target
= control target key end

     0   :  { %v322_v0 = vmov 0.0   ;;  %vm323_vm0 = vmmov 0   ;;  %s418_s1 = inlined_call_operand.vmem [shape: bf16[128,128], index: 1, kind: input, shape index: {}]   ;;  %s419_s2 = inlined_call_operand.vmem [shape: bf16[128,128], index: 2, kind: input, shape index: {}]   ;;  %s420_s0 = inlined_call_operand.vmem [shape: bf16[16,128], index: 0, kind: input, shape index: {}]   ;;  %s421_s3 = inlined_call_operand.vmem [shape: f32[1,128], index: 3, kind: input, shape index: {}]   ;;  %s422_s4 = inlined_call_operand.vmem [shape: f32[16,128], index: 4, kind: output, shape index: {}]  }
   0x1   :  { %299 = vmatprep.subr.bf16.mxu0 %v322_v0  ;;  %v282_v1 = vld [vmem:[%s418_s1 + $0x38] sm:$0xff]   ;;  %v281_v3 = vld [vmem:[%s418_s1 + $0x30] sm:$0xff]   ;;  %315 = vmatprep.mubr.msk.bf16.mxu0 %vm323_vm0, %v322_v0  ;;  %v280_v19 = vld [vmem:[%s418_s1 + $0x28] sm:$0xff]  }
   0x2   :  { %v289_v2 = vld [vmem:[%s419_s2 + $0x38] sm:$0xff]   ;;  %v242_v4 = vunpack.c.l.bf16 %v282_v1  ;;  %v243_v5 = vunpack.c.h.bf16 %v282_v1  ;;  %v288_v8 = vld [vmem:[%s419_s2 + $0x30] sm:$0xff]   ;;  %v238_v9 = vunpack.c.l.bf16 %v281_v3  ;;  %v239_v10 = vunpack.c.h.bf16 %v281_v3  ;;  %v287_v24 = vld [vmem:[%s419_s2 + $0x28] sm:$0xff]  }
   0x3   :  { %v274_v6 = vunpack.c.l.bf16 %v289_v2  ;;  %v275_v7 = vunpack.c.h.bf16 %v289_v2  ;;  %v270_v11 = vunpack.c.l.bf16 %v288_v8  ;;  %v271_v12 = vunpack.c.h.bf16 %v288_v8  ;;  %v279_v33 = vld [vmem:[%s418_s1 + $0x20] sm:$0xff]   ;;  %v278_v46 = vld [vmem:[%s418_s1 + $0x18] sm:$0xff]   ;;  %v277_v59 = vld [vmem:[%s418_s1 + $0x10] sm:$0xff]  }
   0x4   :  { %v77_v13 = vmul.f32 0.9, %v242_v4  ;;  %v78_v14 = vmul.f32 0.9, %v243_v5  ;;  %v75_v18 = vmul.f32 0.9, %v238_v9  ;;  %v234_v26 = vunpack.c.l.bf16 %v280_v19 }
   0x5   :  { %v125_v15 = vmul.f32 0.1, %v274_v6  ;;  %v126_v16 = vmul.f32 0.1, %v275_v7  ;;  %v76_v21 = vmul.f32 0.9, %v239_v10  ;;  %v235_v27 = vunpack.c.h.bf16 %v280_v19 }
   0x6   :  { %v123_v22 = vmul.f32 0.1, %v270_v11  ;;  %v124_v23 = vmul.f32 0.1, %v271_v12  ;;  %v266_v30 = vunpack.c.l.bf16 %v287_v24  ;;  %v267_v31 = vunpack.c.h.bf16 %v287_v24  ;;  %v286_v38 = vld [vmem:[%s419_s2 + $0x20] sm:$0xff]   ;;  %v285_v51 = vld [vmem:[%s419_s2 + $0x18] sm:$0xff]  }
   0x7   :  { %v141_v17 = vadd.f32 %v125_v15, %v77_v13  ;;  %v142_v20 = vadd.f32 %v126_v16, %v78_v14  ;;  %v73_v32 = vmul.f32 0.9, %v234_v26  ;;  %v74_v35 = vmul.f32 0.9, %v235_v27  ;;  %v284_v1 = vld [vmem:[%s419_s2 + $0x10] sm:$0xff]   ;;  %v276_v9 = vld [vmem:[%s418_s1 + $0x8] sm:$0xff]  }
   0x8   :  { %v139_v28 = vadd.f32 %v123_v22, %v75_v18  ;;  %v140_v29 = vadd.f32 %v124_v23, %v76_v21  ;;  %v121_v36 = vmul.f32 0.1, %v266_v30  ;;  %v122_v37 = vmul.f32 0.1, %v267_v31  ;;  %v283_v14 = vld [vmem:[%s419_s2 + $0x8] sm:$0xff]   ;;  %v213_v22 = vld [vmem:[%s418_s1] sm:$0xff]  }
   0x9   :  { %v150_v25 = vpack.c.bf16 %v142_v20, %v141_v17  ;;  %v230_v39 = vunpack.c.l.bf16 %v279_v33  ;;  %v231_v40 = vunpack.c.h.bf16 %v279_v33  ;;  %v262_v43 = vunpack.c.l.bf16 %v286_v38  ;;  %v245_v27 = vld [vmem:[%s419_s2] sm:$0xff]  }
   0xa   :  { %v149_v34 = vpack.c.bf16 %v140_v29, %v139_v28  ;;  %v137_v41 = vadd.f32 %v121_v36, %v73_v32  ;;  %v138_v42 = vadd.f32 %v122_v37, %v74_v35  ;;  %v263_v44 = vunpack.c.h.bf16 %v286_v38 }
   0xb   :  { %300 = vmatpush3.bf16.xpose.msra.mxu0 %v150_v25  ;;  %v71_v45 = vmul.f32 0.9, %v230_v39  ;;  %v72_v48 = vmul.f32 0.9, %v231_v40  ;;  %v119_v49 = vmul.f32 0.1, %v262_v43  ;;  %v226_v52 = vunpack.c.l.bf16 %v278_v46 }
   0xc   :  { %301 = vmatprep.subr.bf16.mxu0 %v322_v0  ;;  %v148_v47 = vpack.c.bf16 %v138_v42, %v137_v41  ;;  %v120_v50 = vmul.f32 0.1, %v263_v44  ;;  %v227_v53 = vunpack.c.h.bf16 %v278_v46  ;;  %v258_v56 = vunpack.c.l.bf16 %v285_v51  ;;  %v321_v42 = vld [vmem:[%s420_s0] sm:$0xff]  }
   0xd   :  { %v135_v54 = vadd.f32 %v119_v49, %v71_v45  ;;  %v259_v57 = vunpack.c.h.bf16 %v285_v51  ;;  %v69_v58 = vmul.f32 0.9, %v226_v52  ;;  %v222_v2 = vunpack.c.l.bf16 %v277_v59  ;;  %v210_v43 = vld [vmem:[%s421_s3] ss:$0 sm:$0xff] }
   0xe   :  { %v136_v55 = vadd.f32 %v120_v50, %v72_v48  ;;  %v70_v61 = vmul.f32 0.9, %v227_v53  ;;  %v117_v62 = vmul.f32 0.1, %v258_v56  ;;  %v223_v3 = vunpack.c.h.bf16 %v277_v59 }
   0xf   :  { %v118_v63 = vmul.f32 0.1, %v259_v57  ;;  %v254_v6 = vunpack.c.l.bf16 %v284_v1  ;;  %v255_v7 = vunpack.c.h.bf16 %v284_v1  ;;  %v67_v8 = vmul.f32 0.9, %v222_v2 }
  0x10   :  { %v147_v60 = vpack.c.bf16 %v136_v55, %v135_v54  ;;  %v133_v4 = vadd.f32 %v117_v62, %v69_v58  ;;  %v68_v11 = vmul.f32 0.9, %v223_v3  ;;  %v218_v15 = vunpack.c.l.bf16 %v276_v9 }
  0x11   :  { %v134_v5 = vadd.f32 %v118_v63, %v70_v61  ;;  %v115_v12 = vmul.f32 0.1, %v254_v6  ;;  %v116_v13 = vmul.f32 0.1, %v255_v7  ;;  %v219_v16 = vunpack.c.h.bf16 %v276_v9 }
  0x12   :  { %v250_v19 = vunpack.c.l.bf16 %v283_v14  ;;  %v251_v20 = vunpack.c.h.bf16 %v283_v14  ;;  %v65_v21 = vmul.f32 0.9, %v218_v15  ;;  %v214_v28 = vunpack.c.l.bf16 %v213_v22 }
  0x13   :  { %302 = vmatpush3.bf16.xpose.msra.mxu0 %v149_v34  ;;  %v146_v10 = vpack.c.bf16 %v134_v5, %v133_v4  ;;  %v131_v17 = vadd.f32 %v115_v12, %v67_v8  ;;  %v132_v18 = vadd.f32 %v116_v13, %v68_v11  ;;  %v66_v24 = vmul.f32 0.9, %v219_v16 }
  0x14   :  { %303 = vmatprep.subr.bf16.mxu0 %v322_v0  ;;  %v113_v25 = vmul.f32 0.1, %v250_v19  ;;  %v114_v26 = vmul.f32 0.1, %v251_v20  ;;  %v215_v29 = vunpack.c.h.bf16 %v213_v22  ;;  %v246_v32 = vunpack.c.l.bf16 %v245_v27 }
  0x15   :  { %v145_v23 = vpack.c.bf16 %v132_v18, %v131_v17  ;;  %v247_v33 = vunpack.c.h.bf16 %v245_v27  ;;  %v63_v34 = vmul.f32 0.9, %v214_v28 }
  0x16   :  { %v129_v30 = vadd.f32 %v113_v25, %v65_v21  ;;  %v130_v31 = vadd.f32 %v114_v26, %v66_v24  ;;  %v64_v36 = vmul.f32 0.9, %v215_v29  ;;  %v111_v37 = vmul.f32 0.1, %v246_v32 }
  0x17   :  { %v112_v38 = vmul.f32 0.1, %v247_v33 }
  0x18   :  { %v144_v35 = vpack.c.bf16 %v130_v31, %v129_v30  ;;  %v127_v39 = vadd.f32 %v111_v37, %v63_v34 }
  0x19   :  { %v128_v40 = vadd.f32 %v112_v38, %v64_v36 }
  0x1b   :  { %304 = vmatpush3.bf16.xpose.msra.mxu0 %v148_v47  ;;  %v143_v41 = vpack.c.bf16 %v128_v40, %v127_v39 }
  0x1c   :  { %305 = vmatprep.subr.bf16.mxu0 %v322_v0 }
  0x23   :  { %306 = vmatpush3.bf16.xpose.msra.mxu0 %v147_v60 }
  0x24   :  { %307 = vmatprep.subr.bf16.mxu0 %v322_v0 }
  0x2b   :  { %308 = vmatpush3.bf16.xpose.msra.mxu0 %v146_v10 }
  0x2c   :  { %309 = vmatprep.subr.bf16.mxu0 %v322_v0 }
  0x33   :  { %310 = vmatpush3.bf16.xpose.msra.mxu0 %v145_v23 }
  0x34   :  { %311 = vmatprep.subr.bf16.mxu0 %v322_v0 }
  0x3b   :  { %312 = vmatpush3.bf16.xpose.msra.mxu0 %v144_v35 }
  0x3c   :  { %313 = vmatprep.subr.bf16.mxu0 %v322_v0 }
  0x43   :  { %314 = vmatpush3.bf16.xpose.msra.mxu0 %v143_v41 }
  0x4a   :  { %316 = vmatmul.mubr.bf16.vlgmr.msra.gmra.mxu0 %v321_v42 }
 0x10a   :  { %v195_v44 = vpop.f32.mrf.mxu0 }
 0x10b   :  { %v202_v45 = vadd.f32 %v210_v43, %v195_v44 }
 0x10c   :  { %v317_v46 = vpop.f32.mrf.mxu0 }
 0x10d   :  { %204 = vst [vmem:[%s422_s4] sm:$0xff] %v202_v45 }
 0x10e   :  { %v198_v47 = vpop.f32.mrf.mxu0 }
 0x10f   :  { %v203_v0 = vadd.f32 %v210_v43, %v198_v47 }
 0x110   :  { %v318_v48 = vpop.f32.mrf.mxu0 }
 0x111   :  { %205 = vst [vmem:[%s422_s4 + $0x8] sm:$0xff] %v203_v0 }

</bundles_post_ra>
